<compile_context>
chip_gen: v7x
topology: tpu7x:2x2x1
jax: 0.10.0
libtpu: 0.0.40
codegen_flags: <defaults>
</compile_context>

<pallas_src>
import jax
import jax.numpy as jnp
from jax import lax
from jax.experimental import pallas as pl
from jax.experimental.pallas import tpu as pltpu


def kernel_updator_kernel(
    upd_ref, inp_ref,                    # [tm, C] bf16 activations
    wd_ref, wi_ref,                      # [C, 2F] bf16
    wg_ref,                              # [2F, 2F] bf16: rows 0..F-1 = [wug | wig], rows F.. = 0
    wfc2_ref,                            # [2F, C] bf16: vstack([wfc, wfc])
    avg_ref,                             # [2F, 2F] f32 block-averaging matrix (per-half mean)
    bias2f_ref,                          # [3, 2F] f32: bd, bi, (bug|big)
    normf_ref,                           # [4, 2F] f32: (g_nin|g_inin), (b_nin|b_inin), (g_nout|g_inout), (b_nout|b_inout)
    cvec_ref,                            # [3, C]  f32: bfc, g_fcn, b_fcn
    out_ref,                             # [tm, C]
):
    f32 = jnp.float32
    bf16 = jnp.bfloat16
    tm = upd_ref.shape[0]
    two_f = wg_ref.shape[1]
    feat = two_f // 2
    eps = 1e-5

    upd = upd_ref[...]
    inp = inp_ref[...]

    # parameters = dynamic_layer(update_feature); input_feats = input_layer(input_feature)
    params = jnp.dot(upd, wd_ref[...], preferred_element_type=f32) + bias2f_ref[0:1, :]
    input_feats = jnp.dot(inp, wi_ref[...], preferred_element_type=f32) + bias2f_ref[1:2, :]

    # Lane-full gate path: K is zero-padded to 2F host-side, so no 64-lane slice
    # or sub-width bf16 cast ahead of the MXU (K=64 vs K=128 costs the same).
    prod = params * input_feats                                               # [tm, 2F]
    gates = (jnp.dot(prod.astype(bf16), wg_ref[...], preferred_element_type=f32)
             + bias2f_ref[2:3, :])                                            # [update_gate | input_gate] pre-LN

    # Co-locate [param_out | input_out] lane-full: one XLU roll + lane select.
    lane = lax.broadcasted_iota(jnp.int32, (tm, two_f), 1)
    outs = jnp.where(lane < feat, pltpu.roll(params, feat, axis=1), input_feats)

    avg = avg_ref[...]

    def half_layer_norm(x, gamma, beta):
        # Per-half LayerNorm statistics on the MXU (broadcast-back is free);
        # centered variance, clamped >= 0 for numerical safety.
        mean = jnp.dot(x, avg, preferred_element_type=f32)
        c = x - mean
        var = jnp.maximum(jnp.dot(c * c, avg, preferred_element_type=f32), 0.0)
        return c * lax.rsqrt(var + eps) * gamma + beta

    # [ sigmoid(norm_in(update_gate)) | sigmoid(input_norm_in(input_gate)) ]
    sig_gates = jax.nn.sigmoid(half_layer_norm(gates, normf_ref[0:1, :], normf_ref[1:2, :]))
    # [ norm_out(param_out) | input_norm_out(input_out) ]     (activate_out=False)
    outs_ln = half_layer_norm(outs, normf_ref[2:3, :], normf_ref[3:4, :])

    # features = ug*param_out + ig*input_out is absorbed into the stacked fc matmul:
    # z @ [wfc; wfc] = (ug*param_out) @ wfc + (ig*input_out) @ wfc
    z = sig_gates * outs_ln                                                   # [tm, 2F]
    y = jnp.dot(z.astype(bf16), wfc2_ref[...], preferred_element_type=f32) + cvec_ref[0:1, :]

    # fc_norm over the C=256 lanes (kept on the XLU: only 2 reduce chains/row), then ReLU.
    m = jnp.mean(y, axis=-1, keepdims=True)
    v = jnp.mean((y - m) ** 2, axis=-1, keepdims=True)
    y = (y - m) * lax.rsqrt(v + eps) * cvec_ref[1:2, :] + cvec_ref[2:3, :]
    out_ref[...] = jnp.maximum(y, 0.0).astype(out_ref.dtype)


def prepare_weights(w):
    """One-time packing of module weights for the kernel (hoisted out of the forward)."""
    C = w["wd"].shape[0]
    F = w["wig"].shape[0]
    bf16 = jnp.bfloat16
    f32 = jnp.float32

    wd = w["wd"].astype(bf16)                                                 # [C, 2F]
    wi = w["wi"].astype(bf16)                                                 # [C, 2F]
    # Gate weight: lanes [update_gate | input_gate], K zero-padded to 2F.
    wg_top = jnp.concatenate([w["wug"], w["wig"]], axis=1)                    # [F, 2F]
    wg = jnp.concatenate([wg_top, jnp.zeros((F, 2 * F), f32)], axis=0).astype(bf16)   # [2F, 2F]
    # Stacked fc weight so the gated sum is absorbed into the matmul.
    wfc2 = jnp.concatenate([w["wfc"], w["wfc"]], axis=0).astype(bf16)         # [2F, C]

    bias2f = jnp.concatenate(
        [w["bd"], w["bi"], jnp.concatenate([w["bug"], w["big"]], axis=1)],
        axis=0).astype(f32)                                                   # [3, 2F]
    normf = jnp.concatenate(
        [jnp.concatenate([w["g_nin"], w["g_inin"]], axis=1),
         jnp.concatenate([w["b_nin"], w["b_inin"]], axis=1),
         jnp.concatenate([w["g_nout"], w["g_inout"]], axis=1),
         jnp.concatenate([w["b_nout"], w["b_inout"]], axis=1)],
        axis=0).astype(f32)                                                   # [4, 2F] lane-dense
    cvec = jnp.concatenate([w["bfc"], w["g_fcn"], w["b_fcn"]], axis=0).astype(f32)    # [3, C]

    # Block-averaging matrix: avg[i,j] = 1/F if i and j are in the same half.
    idx = jnp.arange(2 * F)
    same_half = (idx[:, None] < F) == (idx[None, :] < F)
    avg = jnp.where(same_half, 1.0 / F, 0.0).astype(f32)                      # [2F, 2F]

    return {"wd": wd, "wi": wi, "wg": wg, "wfc2": wfc2, "avg": avg,
            "bias2f": bias2f, "normf": normf, "cvec": cvec, "C": C, "F": F}


def _pick_tm(N, cap=512):
    """Largest multiple-of-8 divisor of N (<= cap); prefer >=2 grid steps when N >= 16
    so v7x's two TensorCores both run.  Falls back to a single full-extent tile."""
    cands = [t for t in range(8, min(cap, N) + 1, 8) if N % t == 0]
    if not cands:
        return N                       # full-extent block bypasses the (8,128) rule
    if N >= 16:
        split = [t for t in cands if N // t >= 2]
        if split:
            return max(split)
    return max(cands)


def kernel_updator_forward(update_feature, input_feature, weights, *, tm=None, out_dtype=None):
    """update_feature, input_feature: [B, Ncls, C] -> output [B, Ncls, C].

    `weights` may be a raw weight dict (auto-packed) or the result of
    prepare_weights().  `out_dtype=jnp.bfloat16` halves output HBM traffic.
    On v6e/v7x it is worth sweeping tm up to 1024 (VMEM is not the constraint)."""
    if "wfc2" not in weights:
        weights = prepare_weights(weights)

    B, Ncls, C = update_feature.shape
    N = B * Ncls
    F = weights["F"]
    two_f = 2 * F
    assert C == weights["C"]
    if out_dtype is None:
        out_dtype = update_feature.dtype
    if tm is None:
        tm = _pick_tm(N)
    assert N % tm == 0 and (tm % 8 == 0 or tm == N)

    bf16 = jnp.bfloat16
    upd2 = update_feature.reshape(N, C).astype(bf16)
    inp2 = input_feature.reshape(N, C).astype(bf16)

    w_args = [weights[k] for k in ("wd", "wi", "wg", "wfc2", "avg", "bias2f", "normf", "cvec")]

    row_spec = pl.BlockSpec((tm, C), lambda i: (i, 0))
    w_specs = [pl.BlockSpec(w.shape, lambda i: (0, 0)) for w in w_args]

    # Advisory cost hint: main bf16 matmuls + the four f32 averaging matmuls.
    flops = 2 * N * (2 * C * two_f + two_f * two_f + two_f * C + 4 * two_f * two_f)
    transcendentals = N * (3 * two_f + C)             # sigmoids + rsqrt lanes
    bytes_accessed = (upd2.size * 2 + inp2.size * 2 + N * C * jnp.dtype(out_dtype).itemsize
                      + sum(int(w.size) * w.dtype.itemsize for w in w_args))

    out = pl.pallas_call(
        kernel_updator_kernel,
        out_shape=jax.ShapeDtypeStruct((N, C), out_dtype),
        grid_spec=pltpu.PrefetchScalarGridSpec(
            num_scalar_prefetch=0,
            grid=(N // tm,),
            in_specs=[row_spec, row_spec] + w_specs,
            out_specs=pl.BlockSpec((tm, C), lambda i: (i, 0)),
        ),
        compiler_params=pltpu.CompilerParams(
            dimension_semantics=("parallel",)),
        cost_estimate=pl.CostEstimate(
            flops=flops,
            transcendentals=transcendentals,
            bytes_accessed=bytes_accessed),
    )(upd2, inp2, *w_args)
    return out.reshape(B, Ncls, C)


def make_weights(key, in_channels=256, feat_channels=64):
    """Deterministic synthetic params. Linear weights stored as [in, out]."""
    C, F = in_channels, feat_channels
    ks = jax.random.split(key, 6)
    s = 0.02

    def rnd(k, shape):
        return (s * jax.random.normal(k, shape)).astype(jnp.float32)

    return {
        "wd": rnd(ks[0], (C, 2 * F)), "bd": rnd(ks[1], (1, 2 * F)),
        "wi": rnd(ks[2], (C, 2 * F)), "bi": rnd(ks[3], (1, 2 * F)),
        "wig": rnd(ks[4], (F, F)), "big": jnp.zeros((1, F), jnp.float32),
        "wug": rnd(ks[5], (F, F)), "bug": jnp.zeros((1, F), jnp.float32),
        "g_nin": jnp.ones((1, F), jnp.float32), "b_nin": jnp.zeros((1, F), jnp.float32),
        "g_inin": jnp.ones((1, F), jnp.float32), "b_inin": jnp.zeros((1, F), jnp.float32),
        "g_nout": jnp.ones((1, F), jnp.float32), "b_nout": jnp.zeros((1, F), jnp.float32),
        "g_inout": jnp.ones((1, F), jnp.float32), "b_inout": jnp.zeros((1, F), jnp.float32),
        "wfc": rnd(jax.random.fold_in(key, 7), (F, C)),
        "bfc": jnp.zeros((1, C), jnp.float32),
        "g_fcn": jnp.ones((1, C), jnp.float32), "b_fcn": jnp.zeros((1, C), jnp.float32),
    }


def _ln(x, g, b, eps=1e-5):
    m = jnp.mean(x, -1, keepdims=True)
    v = jnp.mean((x - m) ** 2, -1, keepdims=True)
    return (x - m) / jnp.sqrt(v + eps) * g + b


def reference_forward(upd, inp, w, *, mm_dtype=jnp.float32):
    """Pure-JAX reference mirroring the PyTorch module.

    mm_dtype=jnp.bfloat16 roughly mirrors the kernel's bf16-input / f32-accumulate
    matmul precision; mm_dtype=jnp.float32 is the strict f32 module math.
    """
    def mm(x, W):
        return jnp.dot(x.astype(mm_dtype), W.astype(mm_dtype),
                       preferred_element_type=jnp.float32)

    F = w["wig"].shape[0]
    params = mm(upd, w["wd"]) + w["bd"]
    input_feats = mm(inp, w["wi"]) + w["bi"]
    gate_feats = (input_feats * params)[..., :F]
    w_g = jnp.concatenate([w["wig"], w["wug"]], axis=1)
    b_g = jnp.concatenate([w["big"], w["bug"]], axis=1)
    gates = mm(gate_feats, w_g) + b_g
    ig = jax.nn.sigmoid(_ln(gates[..., :F], w["g_inin"], w["b_inin"]))
    ug = jax.nn.sigmoid(_ln(gates[..., F:], w["g_nin"], w["b_nin"]))
    param_out = _ln(params[..., F:], w["g_nout"], w["b_nout"])
    input_out = _ln(input_feats[..., F:], w["g_inout"], w["b_inout"])
    feats = ug * param_out + ig * input_out
    feats = _ln(mm(feats, w["wfc"]) + w["bfc"], w["g_fcn"], w["b_fcn"])
    return jnp.maximum(feats, 0.0)


if __name__ == "__main__":
    B, Ncls = 2, 8            # N = 16 rows -> tm=8, grid=(2,) (both v7x cores)
    C, F = 256, 64            # in_channels / feat_channels (module defaults)

    key = jax.random.PRNGKey(0)
    k1, k2, k3 = jax.random.split(key, 3)
    update_feature = jax.random.normal(k1, (B, Ncls, C), dtype=jnp.float32)
    input_feature = jax.random.normal(k2, (B, Ncls, C), dtype=jnp.float32)
    weights = make_weights(k3, C, F)
    packed = prepare_weights(weights)     # one-time packing, hoisted out of the per-call path

    out = kernel_updator_forward(update_feature, input_feature, packed)
    out = jax.block_until_ready(out)
    assert out.shape == (B, Ncls, C)
    assert bool(jnp.all(jnp.isfinite(out)))

    # Precision-matched reference (bf16 matmul inputs, f32 accumulation).
    ref_bf16 = reference_forward(update_feature, input_feature, weights,
                                 mm_dtype=jnp.bfloat16)
    err_matched = float(jnp.max(jnp.abs(out - ref_bf16)))
    assert err_matched < 5e-2, f"mismatch vs matched reference: {err_matched}"

    # Strict f32 module math — loose tolerance accounts for bf16 matmuls.
    ref_f32 = reference_forward(update_feature, input_feature, weights,
                                mm_dtype=jnp.float32)
    err_f32 = float(jnp.max(jnp.abs(out - ref_f32)))
    assert err_f32 < 1e-1, f"mismatch vs f32 reference: {err_f32}"

    print("KERNEL_OK")
</pallas_src>

<mosaic_0001>
module attributes {stable_mosaic.version = 11 : i64} {
  func.func @kernel_updator_kernel(%arg0: i32, %arg1: memref<8x256xbf16, #tpu.memory_space<vmem>>, %arg2: memref<8x256xbf16, #tpu.memory_space<vmem>>, %arg3: memref<256x128xbf16, #tpu.memory_space<vmem>>, %arg4: memref<256x128xbf16, #tpu.memory_space<vmem>>, %arg5: memref<128x128xbf16, #tpu.memory_space<vmem>>, %arg6: memref<128x256xbf16, #tpu.memory_space<vmem>>, %arg7: memref<128x128xf32, #tpu.memory_space<vmem>>, %arg8: memref<3x128xf32, #tpu.memory_space<vmem>>, %arg9: memref<4x128xf32, #tpu.memory_space<vmem>>, %arg10: memref<3x256xf32, #tpu.memory_space<vmem>>, %arg11: memref<8x256xf32, #tpu.memory_space<vmem>>) attributes {dimension_semantics = [#tpu.dimension_semantics<parallel>], iteration_bounds = array<i64: 2>, scalar_prefetch = 0 : i64, scratch_operands = 0 : i64, tpu.core_type = #tpu.core_type<tc>, window_params = [{transform_indices = @transform_0, window_bounds = array<i64: 8, 256>}, {transform_indices = @transform_1, window_bounds = array<i64: 8, 256>}, {pipeline_mode = #tpu.pipeline_mode<synchronous>, transform_indices = @transform_2, window_bounds = array<i64: 256, 128>}, {pipeline_mode = #tpu.pipeline_mode<synchronous>, transform_indices = @transform_3, window_bounds = array<i64: 256, 128>}, {pipeline_mode = #tpu.pipeline_mode<synchronous>, transform_indices = @transform_4, window_bounds = array<i64: 128, 128>}, {pipeline_mode = #tpu.pipeline_mode<synchronous>, transform_indices = @transform_5, window_bounds = array<i64: 128, 256>}, {pipeline_mode = #tpu.pipeline_mode<synchronous>, transform_indices = @transform_6, window_bounds = array<i64: 128, 128>}, {pipeline_mode = #tpu.pipeline_mode<synchronous>, transform_indices = @transform_7, window_bounds = array<i64: 3, 128>}, {pipeline_mode = #tpu.pipeline_mode<synchronous>, transform_indices = @transform_8, window_bounds = array<i64: 4, 128>}, {pipeline_mode = #tpu.pipeline_mode<synchronous>, transform_indices = @transform_9, window_bounds = array<i64: 3, 256>}, {transform_indices = @transform_10, window_bounds = array<i64: 8, 256>}]} {
    %c0 = arith.constant 0 : index
    %c0_0 = arith.constant 0 : index
    %0 = vector.load %arg1[%c0, %c0_0] : memref<8x256xbf16, #tpu.memory_space<vmem>>, vector<8x256xbf16>
    %c0_1 = arith.constant 0 : index
    %c0_2 = arith.constant 0 : index
    %1 = vector.load %arg2[%c0_1, %c0_2] : memref<8x256xbf16, #tpu.memory_space<vmem>>, vector<8x256xbf16>
    %c0_3 = arith.constant 0 : index
    %c0_4 = arith.constant 0 : index
    %2 = vector.load %arg3[%c0_3, %c0_4] : memref<256x128xbf16, #tpu.memory_space<vmem>>, vector<256x128xbf16>
    %cst = arith.constant dense<0.000000e+00> : vector<8x128xf32>
    %3 = tpu.matmul %0, %2, %cst {dimension_numbers = #tpu.dot_dimension_numbers<[1], [0], [0], [1], [0, 0, 1, 1], [], []>} : vector<8x256xbf16>, vector<256x128xbf16>, vector<8x128xf32> -> vector<8x128xf32>
    %c0_5 = arith.constant 0 : index
    %c0_6 = arith.constant 0 : index
    %4 = vector.load %arg8[%c0_5, %c0_6] : memref<3x128xf32, #tpu.memory_space<vmem>>, vector<1x128xf32>
    %5 = vector.broadcast %4 : vector<1x128xf32> to vector<8x128xf32>
    %6 = arith.addf %3, %5 : vector<8x128xf32>
    %c0_7 = arith.constant 0 : index
    %c0_8 = arith.constant 0 : index
    %7 = vector.load %arg4[%c0_7, %c0_8] : memref<256x128xbf16, #tpu.memory_space<vmem>>, vector<256x128xbf16>
    %cst_9 = arith.constant dense<0.000000e+00> : vector<8x128xf32>
    %8 = tpu.matmul %1, %7, %cst_9 {dimension_numbers = #tpu.dot_dimension_numbers<[1], [0], [0], [1], [0, 0, 1, 1], [], []>} : vector<8x256xbf16>, vector<256x128xbf16>, vector<8x128xf32> -> vector<8x128xf32>
    %c1 = arith.constant 1 : index
    %c0_10 = arith.constant 0 : index
    %9 = vector.load %arg8[%c1, %c0_10] : memref<3x128xf32, #tpu.memory_space<vmem>>, vector<1x128xf32>
    %10 = vector.broadcast %9 : vector<1x128xf32> to vector<8x128xf32>
    %11 = arith.addf %8, %10 : vector<8x128xf32>
    %12 = arith.mulf %6, %11 : vector<8x128xf32>
    %13 = arith.truncf %12 : vector<8x128xf32> to vector<8x128xbf16>
    %c0_11 = arith.constant 0 : index
    %c0_12 = arith.constant 0 : index
    %14 = vector.load %arg5[%c0_11, %c0_12] : memref<128x128xbf16, #tpu.memory_space<vmem>>, vector<128x128xbf16>
    %cst_13 = arith.constant dense<0.000000e+00> : vector<8x128xf32>
    %15 = tpu.matmul %13, %14, %cst_13 {dimension_numbers = #tpu.dot_dimension_numbers<[1], [0], [0], [1], [0, 0, 1, 1], [], []>} : vector<8x128xbf16>, vector<128x128xbf16>, vector<8x128xf32> -> vector<8x128xf32>
    %c2 = arith.constant 2 : index
    %c0_14 = arith.constant 0 : index
    %16 = vector.load %arg8[%c2, %c0_14] : memref<3x128xf32, #tpu.memory_space<vmem>>, vector<1x128xf32>
    %17 = vector.broadcast %16 : vector<1x128xf32> to vector<8x128xf32>
    %18 = arith.addf %15, %17 : vector<8x128xf32>
    %19 = tpu.iota {dimensions = array<i32: 1>} : vector<8x128xi32>
    %c64_i32 = arith.constant 64 : i32
    %20 = vector.broadcast %c64_i32 : i32 to vector<8x128xi32>
    %21 = arith.cmpi slt, %19, %20 : vector<8x128xi32>
    %c64_i32_15 = arith.constant 64 : i32
    %22 = tpu.dynamic_rotate %6 by %c64_i32_15 dim 1 : vector<8x128xf32>, i32 -> vector<8x128xf32>
    %23 = arith.select %21, %22, %11 : vector<8x128xi1>, vector<8x128xf32>
    %c0_16 = arith.constant 0 : index
    %c0_17 = arith.constant 0 : index
    %24 = vector.load %arg7[%c0_16, %c0_17] : memref<128x128xf32, #tpu.memory_space<vmem>>, vector<128x128xf32>
    %c0_18 = arith.constant 0 : index
    %c0_19 = arith.constant 0 : index
    %25 = vector.load %arg9[%c0_18, %c0_19] : memref<4x128xf32, #tpu.memory_space<vmem>>, vector<1x128xf32>
    %c1_20 = arith.constant 1 : index
    %c0_21 = arith.constant 0 : index
    %26 = vector.load %arg9[%c1_20, %c0_21] : memref<4x128xf32, #tpu.memory_space<vmem>>, vector<1x128xf32>
    %cst_22 = arith.constant dense<0.000000e+00> : vector<8x128xf32>
    %27 = tpu.matmul %18, %24, %cst_22 {dimension_numbers = #tpu.dot_dimension_numbers<[1], [0], [0], [1], [0, 0, 1, 1], [], []>} : vector<8x128xf32>, vector<128x128xf32>, vector<8x128xf32> -> vector<8x128xf32>
    %28 = arith.subf %18, %27 : vector<8x128xf32>
    %29 = arith.mulf %28, %28 : vector<8x128xf32>
    %cst_23 = arith.constant dense<0.000000e+00> : vector<8x128xf32>
    %30 = tpu.matmul %29, %24, %cst_23 {dimension_numbers = #tpu.dot_dimension_numbers<[1], [0], [0], [1], [0, 0, 1, 1], [], []>} : vector<8x128xf32>, vector<128x128xf32>, vector<8x128xf32> -> vector<8x128xf32>
    %cst_24 = arith.constant 0.000000e+00 : f32
    %31 = vector.broadcast %cst_24 : f32 to vector<8x128xf32>
    %32 = arith.maximumf %30, %31 : vector<8x128xf32>
    %cst_25 = arith.constant 9.99999974E-6 : f32
    %33 = vector.broadcast %cst_25 : f32 to vector<8x128xf32>
    %34 = arith.addf %32, %33 : vector<8x128xf32>
    %35 = math.rsqrt %34 : vector<8x128xf32>
    %36 = arith.mulf %28, %35 : vector<8x128xf32>
    %37 = vector.broadcast %25 : vector<1x128xf32> to vector<8x128xf32>
    %38 = arith.mulf %36, %37 : vector<8x128xf32>
    %39 = vector.broadcast %26 : vector<1x128xf32> to vector<8x128xf32>
    %40 = arith.addf %38, %39 : vector<8x128xf32>
    %41 = arith.negf %40 : vector<8x128xf32>
    %42 = math.exp %41 : vector<8x128xf32>
    %cst_26 = arith.constant 1.000000e+00 : f32
    %43 = vector.broadcast %cst_26 : f32 to vector<8x128xf32>
    %44 = arith.addf %43, %42 : vector<8x128xf32>
    %45 = arith.divf %43, %44 : vector<8x128xf32>
    %c2_27 = arith.constant 2 : index
    %c0_28 = arith.constant 0 : index
    %46 = vector.load %arg9[%c2_27, %c0_28] : memref<4x128xf32, #tpu.memory_space<vmem>>, vector<1x128xf32>
    %c3 = arith.constant 3 : index
    %c0_29 = arith.constant 0 : index
    %47 = vector.load %arg9[%c3, %c0_29] : memref<4x128xf32, #tpu.memory_space<vmem>>, vector<1x128xf32>
    %cst_30 = arith.constant dense<0.000000e+00> : vector<8x128xf32>
    %48 = tpu.matmul %23, %24, %cst_30 {dimension_numbers = #tpu.dot_dimension_numbers<[1], [0], [0], [1], [0, 0, 1, 1], [], []>} : vector<8x128xf32>, vector<128x128xf32>, vector<8x128xf32> -> vector<8x128xf32>
    %49 = arith.subf %23, %48 : vector<8x128xf32>
    %50 = arith.mulf %49, %49 : vector<8x128xf32>
    %cst_31 = arith.constant dense<0.000000e+00> : vector<8x128xf32>
    %51 = tpu.matmul %50, %24, %cst_31 {dimension_numbers = #tpu.dot_dimension_numbers<[1], [0], [0], [1], [0, 0, 1, 1], [], []>} : vector<8x128xf32>, vector<128x128xf32>, vector<8x128xf32> -> vector<8x128xf32>
    %cst_32 = arith.constant 0.000000e+00 : f32
    %52 = vector.broadcast %cst_32 : f32 to vector<8x128xf32>
    %53 = arith.maximumf %51, %52 : vector<8x128xf32>
    %cst_33 = arith.constant 9.99999974E-6 : f32
    %54 = vector.broadcast %cst_33 : f32 to vector<8x128xf32>
    %55 = arith.addf %53, %54 : vector<8x128xf32>
    %56 = math.rsqrt %55 : vector<8x128xf32>
    %57 = arith.mulf %49, %56 : vector<8x128xf32>
    %58 = vector.broadcast %46 : vector<1x128xf32> to vector<8x128xf32>
    %59 = arith.mulf %57, %58 : vector<8x128xf32>
    %60 = vector.broadcast %47 : vector<1x128xf32> to vector<8x128xf32>
    %61 = arith.addf %59, %60 : vector<8x128xf32>
    %62 = arith.mulf %45, %61 : vector<8x128xf32>
    %63 = arith.truncf %62 : vector<8x128xf32> to vector<8x128xbf16>
    %c0_34 = arith.constant 0 : index
    %c0_35 = arith.constant 0 : index
    %64 = vector.load %arg6[%c0_34, %c0_35] : memref<128x256xbf16, #tpu.memory_space<vmem>>, vector<128x256xbf16>
    %cst_36 = arith.constant dense<0.000000e+00> : vector<8x256xf32>
    %65 = tpu.matmul %63, %64, %cst_36 {dimension_numbers = #tpu.dot_dimension_numbers<[1], [0], [0], [1], [0, 0, 1, 1], [], []>} : vector<8x128xbf16>, vector<128x256xbf16>, vector<8x256xf32> -> vector<8x256xf32>
    %c0_37 = arith.constant 0 : index
    %c0_38 = arith.constant 0 : index
    %66 = vector.load %arg10[%c0_37, %c0_38] : memref<3x256xf32, #tpu.memory_space<vmem>>, vector<1x256xf32>
    %67 = vector.broadcast %66 : vector<1x256xf32> to vector<8x256xf32>
    %68 = arith.addf %65, %67 : vector<8x256xf32>
    %cst_39 = arith.constant dense<0.000000e+00> : vector<8xf32>
    %69 = vector.multi_reduction <add>, %68, %cst_39 [1] : vector<8x256xf32> to vector<8xf32>
    %70 = vector.shape_cast %69 : vector<8xf32> to vector<8x1xf32>
    %cst_40 = arith.constant 2.560000e+02 : f32
    %71 = vector.broadcast %cst_40 : f32 to vector<8x1xf32>
    %72 = arith.divf %70, %71 : vector<8x1xf32>
    %73 = vector.broadcast %72 : vector<8x1xf32> to vector<8x256xf32>
    %74 = arith.subf %68, %73 : vector<8x256xf32>
    %75 = arith.mulf %74, %74 : vector<8x256xf32>
    %cst_41 = arith.constant dense<0.000000e+00> : vector<8xf32>
    %76 = vector.multi_reduction <add>, %75, %cst_41 [1] : vector<8x256xf32> to vector<8xf32>
    %77 = vector.shape_cast %76 : vector<8xf32> to vector<8x1xf32>
    %cst_42 = arith.constant 2.560000e+02 : f32
    %78 = vector.broadcast %cst_42 : f32 to vector<8x1xf32>
    %79 = arith.divf %77, %78 : vector<8x1xf32>
    %80 = vector.broadcast %72 : vector<8x1xf32> to vector<8x256xf32>
    %81 = arith.subf %68, %80 : vector<8x256xf32>
    %cst_43 = arith.constant 9.99999974E-6 : f32
    %82 = vector.broadcast %cst_43 : f32 to vector<8x1xf32>
    %83 = arith.addf %79, %82 : vector<8x1xf32>
    %84 = math.rsqrt %83 : vector<8x1xf32>
    %85 = vector.broadcast %84 : vector<8x1xf32> to vector<8x256xf32>
    %86 = arith.mulf %81, %85 : vector<8x256xf32>
    %c1_44 = arith.constant 1 : index
    %c0_45 = arith.constant 0 : index
    %87 = vector.load %arg10[%c1_44, %c0_45] : memref<3x256xf32, #tpu.memory_space<vmem>>, vector<1x256xf32>
    %88 = vector.broadcast %87 : vector<1x256xf32> to vector<8x256xf32>
    %89 = arith.mulf %86, %88 : vector<8x256xf32>
    %c2_46 = arith.constant 2 : index
    %c0_47 = arith.constant 0 : index
    %90 = vector.load %arg10[%c2_46, %c0_47] : memref<3x256xf32, #tpu.memory_space<vmem>>, vector<1x256xf32>
    %91 = vector.broadcast %90 : vector<1x256xf32> to vector<8x256xf32>
    %92 = arith.addf %89, %91 : vector<8x256xf32>
    %cst_48 = arith.constant 0.000000e+00 : f32
    %93 = vector.broadcast %cst_48 : f32 to vector<8x256xf32>
    %94 = arith.maximumf %92, %93 : vector<8x256xf32>
    %c0_49 = arith.constant 0 : index
    %c0_50 = arith.constant 0 : index
    %95 = vector.load %arg11[%c0_49, %c0_50] : memref<8x256xf32, #tpu.memory_space<vmem>>, vector<8x256xf32>
    tpu.vector_store %arg11[%c0_49, %c0_50], %94 {strides = array<i32>} : memref<8x256xf32, #tpu.memory_space<vmem>>, vector<8x256xf32>,
    return
  }
  func.func @transform_0(%arg0: i32) -> (i32, i32) {
    %c0_i32 = arith.constant 0 : i32
    %c0_i32_0 = arith.constant 0 : i32
    return %arg0, %c0_i32 : i32, i32
  }
  func.func @transform_1(%arg0: i32) -> (i32, i32) {
    %c0_i32 = arith.constant 0 : i32
    %c0_i32_0 = arith.constant 0 : i32
    return %arg0, %c0_i32 : i32, i32
  }
  func.func @transform_2(%arg0: i32) -> (i32, i32) {
    %c0_i32 = arith.constant 0 : i32
    %c0_i32_0 = arith.constant 0 : i32
    %c0_i32_1 = arith.constant 0 : i32
    return %c0_i32, %c0_i32_0 : i32, i32
  }
  func.func @transform_3(%arg0: i32) -> (i32, i32) {
    %c0_i32 = arith.constant 0 : i32
    %c0_i32_0 = arith.constant 0 : i32
    %c0_i32_1 = arith.constant 0 : i32
    return %c0_i32, %c0_i32_0 : i32, i32
  }
  func.func @transform_4(%arg0: i32) -> (i32, i32) {
    %c0_i32 = arith.constant 0 : i32
    %c0_i32_0 = arith.constant 0 : i32
    %c0_i32_1 = arith.constant 0 : i32
    return %c0_i32, %c0_i32_0 : i32, i32
  }
  func.func @transform_5(%arg0: i32) -> (i32, i32) {
    %c0_i32 = arith.constant 0 : i32
    %c0_i32_0 = arith.constant 0 : i32
    %c0_i32_1 = arith.constant 0 : i32
    return %c0_i32, %c0_i32_0 : i32, i32
  }
  func.func @transform_6(%arg0: i32) -> (i32, i32) {
    %c0_i32 = arith.constant 0 : i32
    %c0_i32_0 = arith.constant 0 : i32
    %c0_i32_1 = arith.constant 0 : i32
    return %c0_i32, %c0_i32_0 : i32, i32
  }
  func.func @transform_7(%arg0: i32) -> (i32, i32) {
    %c0_i32 = arith.constant 0 : i32
    %c0_i32_0 = arith.constant 0 : i32
    %c0_i32_1 = arith.constant 0 : i32
    return %c0_i32, %c0_i32_0 : i32, i32
  }
  func.func @transform_8(%arg0: i32) -> (i32, i32) {
    %c0_i32 = arith.constant 0 : i32
    %c0_i32_0 = arith.constant 0 : i32
    %c0_i32_1 = arith.constant 0 : i32
    return %c0_i32, %c0_i32_0 : i32, i32
  }
  func.func @transform_9(%arg0: i32) -> (i32, i32) {
    %c0_i32 = arith.constant 0 : i32
    %c0_i32_0 = arith.constant 0 : i32
    %c0_i32_1 = arith.constant 0 : i32
    return %c0_i32, %c0_i32_0 : i32, i32
  }
  func.func @transform_10(%arg0: i32) -> (i32, i32) {
    %c0_i32 = arith.constant 0 : i32
    %c0_i32_0 = arith.constant 0 : i32
    return %arg0, %c0_i32 : i32, i32
  }
}

</mosaic_0001>

<bundles_post_ra>
// kernel: tpu_custom_call.1
= control target key start
LH: loop header
LB: loop body
LE: loop exit
PB: predicated region body
PF: predicated region fallthrough
CT: control target
= control target key end

     0   :  { %s3175_s0 = inlined_call_operand.hbm [shape: bf16[16,256], index: 0, kind: input, shape index: {}]   ;;  %s3176_s1 = inlined_call_operand.hbm [shape: bf16[16,256], index: 1, kind: input, shape index: {}]   ;;  %s3177_s2 = inlined_call_operand.hbm [shape: bf16[256,128], index: 2, kind: input, shape index: {}]   ;;  %s3178_s3 = inlined_call_operand.hbm [shape: bf16[256,128], index: 3, kind: input, shape index: {}]   ;;  %s3179_s4 = inlined_call_operand.hbm [shape: bf16[128,128], index: 4, kind: input, shape index: {}]   ;;  %s3180_s5 = inlined_call_operand.hbm [shape: bf16[128,256], index: 5, kind: input, shape index: {}]   ;;  %s3181_s6 = inlined_call_operand.hbm [shape: f32[128,128], index: 6, kind: input, shape index: {}]   ;;  %s3182_s7 = inlined_call_operand.vmem [shape: f32[3,128], index: 7, kind: input, shape index: {}]   ;;  %s3183_s8 = inlined_call_operand.vmem [shape: f32[4,128], index: 8, kind: input, shape index: {}]   ;;  %s3184_s9 = inlined_call_operand.vmem [shape: f32[3,256], index: 9, kind: input, shape index: {}]   ;;  %s3185_s10 = inlined_call_operand.hbm [shape: f32[16,256], index: 10, kind: output, shape index: {}]  }
   0x1   :  { %3194 = sst [smem:[#allocation21_spill]] %s3177_s2 }
   0x2   :  { %3195 = sst [smem:[#allocation22_spill]] %s3178_s3 }
   0x3   :  { %3196 = sst [smem:[#allocation23_spill]] %s3179_s4 }
   0x4   :  { %3197 = sst [smem:[#allocation24_spill]] %s3180_s5 }
   0x5   :  { %3198 = sst [smem:[#allocation25_spill]] %s3181_s6 }
   0x6   :  { %3199 = sst [smem:[#allocation26_spill]] %s3184_s9 }
   0x7   :  { %3200 = sst [smem:[#allocation27_spill]] %s3185_s10 }
   0x8   :  { %15 = vsyncpa [#allocation3], 0 }
   0x9   :  { %17 = vsyncpa [#allocation3 + $0x1], 0 }
   0xa   :  { %18 = vsyncpa [#allocation6], 0 }
   0xb   :  { %20 = vsyncpa [#allocation6 + $0x1], 0 }
   0xc   :  { %21 = vsyncpa [#allocation9], 0 }
   0xd   :  { %22 = vsyncpa [#allocation12], 0 }
   0xe   :  { %23 = vsyncpa [#allocation4], 0 }
   0xf   :  { %25 = vsyncpa [#allocation4 + $0x1], 0  ;;  %s2684_s13 = smov 0   ;;  %s2686_s14 = smov 0  }
  0x10   :  { %s2688_s15 = smov 0   ;;  %s2690_s16 = smov 0  }
  0x11 LB: > { %s2612_s17 = smov [#allocation7]   ;;  %s2705_s19 = sadd.s32 4294967295, %s2610_s16   ;;  %s2610_s16 = sphi %s2690_s16, %s3232_s16   ;;  %s2606_s15 = sphi %s2688_s15, %s3231_s15   ;;  %s2602_s14 = sphi %s2686_s14, %s3230_s14   ;;  %s2598_s13 = sphi %s2684_s13, %s3229_s13  }
  0x12   : > { %s294_s18 = sshll.u32 %s2612_s17, 4  ;;  %p1662_p0 = scmp.ge.s32.totalorder %s2610_s16, 1  ;;  %s2710_s18 = int_to_ptr.vmem [resolvable:$true] %s294_s18 }
  0x13   : > { %p3190_p1 = scmp.eq.s32.totalorder %s2705_s19, 0  ;;  %p282_p2 = scmp.lt.s32.totalorder %s2610_s16, 3 }
  0x14   : > { %s2613_s21 = smov [#allocation8]   ;;  %s2614_s24 = smov [#allocation11]  }
  0x15   : > { %p2712_p3 = pnand %p1662_p0, %p282_p2  ;;  %s307_s22 = sshll.u32 %s2613_s21, 4  ;;  %s2725_s22 = int_to_ptr.vmem [resolvable:$true] %s307_s22 }
  0x16   : > { %s333_s25 = sshll.u32 %s2614_s24, 4  ;;  %s3203_s2 = sld [smem:[#allocation21_spill]]  ;;  %s2727_s25 = int_to_ptr.vmem [resolvable:$true] %s333_s25 }
  0x17   : > { %s3201_s20 = scalar_select %p2712_p3, 1, 0 }
  0x18   : > { %p2165_p5 = pneg %p2712_p3 }
  0x1a   : > { %p2721_p6 = pnand %p2165_p5, %p3190_p1 }
  0x1c   : > { %s2328_s28 = scalar_lea.hbm %s3203_s2, 2048  ;;  %p2737_p8 = pneg %p2721_p6 }
  0x1d   : > { %p2329_p7 = scmp.ne.s32.totalorder %s3203_s2, %s2328_s28  ;;  %p2335_p11 = scmp.lt.u32.totalorder %s2328_s28, %s3203_s2 }
  0x1f   : > { %p2331_p9 = pnand %p2737_p8, %p2329_p7 }
  0x21   : > { %p2332_p10 = pneg %p2331_p9 }
  0x23   : > { %p2337_p12 = pnand %p2335_p11, %p2332_p10 }
  0x25   : > { %2340 = shalt.err (!%p2337_p12)
}
  0x26   : > { %s2341_s21 = scalar_lea.vmem %s2710_s18, 2048  ;;  %p2349_p5 = scmp.lt.s32.totalorder %s2710_s18, %s2710_s18 }
  0x27   : > { %p2342_p13 = scmp.ne.s32.totalorder %s2710_s18, %s2341_s21  ;;  %p2350_p4 = scmp.lt.s32.totalorder %s2341_s21, %s2341_s21 }
  0x29   : > { %p2344_p0 = pnand %p2342_p13, %p2737_p8  ;;  %p2351_p7 = por %p2350_p4, %p2349_p5 }
  0x2b   : > { %p2345_p2 = pneg %p2344_p0 }
  0x2d   : > { %p2352_p9 = pnand %p2351_p7, %p2345_p2 }
  0x2f   : > { %2355 = shalt.err (!%p2352_p9)
}
  0x30   : > { %s3188_s24 = smov 64   ;;  %s3189_s26 = smov 4  }
  0x31   : > { %2168 = dma.hbm_to_vmem [thread:$0]  (!%p2721_p6), %s3203_s2, 2048, %s2710_s18, [#allocation6], %s3188_s24, %s3188_s24, %s3189_s26  }
  0x32   : > { %s3205_s3 = sld [smem:[#allocation22_spill]] }
  0x38   : > { %s2356_s12 = scalar_lea.hbm %s3205_s3, 2048 }
  0x39   : > { %p2357_p4 = scmp.ne.s32.totalorder %s3205_s3, %s2356_s12  ;;  %p2363_p12 = scmp.lt.u32.totalorder %s2356_s12, %s3205_s3 }
  0x3b   : > { %p2359_p10 = pnand %p2357_p4, %p2737_p8 }
  0x3d   : > { %p2360_p11 = pneg %p2359_p10 }
  0x3f   : > { %p2365_p13 = pnand %p2363_p12, %p2360_p11 }
  0x41   : > { %2368 = shalt.err (!%p2365_p13)
}
  0x42   : > { %s2369_s18 = scalar_lea.vmem %s2725_s22, 2048  ;;  %p2377_p7 = scmp.lt.s32.totalorder %s2725_s22, %s2725_s22 }
  0x43   : > { %p2370_p0 = scmp.ne.s32.totalorder %s2725_s22, %s2369_s18  ;;  %p2378_p9 = scmp.lt.s32.totalorder %s2369_s18, %s2369_s18 }
  0x45   : > { %p2372_p2 = pnand %p2370_p0, %p2737_p8  ;;  %p2379_p4 = por %p2378_p9, %p2377_p7 }
  0x47   : > { %p2373_p5 = pneg %p2372_p2 }
  0x49   : > { %p2380_p10 = pnand %p2379_p4, %p2373_p5 }
  0x4b   : > { %2383 = shalt.err (!%p2380_p10)
}
  0x4c   : > { %2171 = dma.hbm_to_vmem [thread:$0]  (!%p2721_p6), %s3205_s3, 2048, %s2725_s22, [#allocation9], %s3188_s24, %s3188_s24, %s3189_s26  }
  0x4d   : > { %s3206_s5 = sld [smem:[#allocation24_spill]] }
  0x53   : > { %s2384_s29 = scalar_lea.hbm %s3206_s5, 2048 }
  0x54   : > { %p2385_p11 = scmp.ne.s32.totalorder %s3206_s5, %s2384_s29  ;;  %p2391_p0 = scmp.lt.u32.totalorder %s2384_s29, %s3206_s5 }
  0x56   : > { %p2387_p12 = pnand %p2385_p11, %p2737_p8 }
  0x58   : > { %p2388_p13 = pneg %p2387_p12 }
  0x5a   : > { %p2393_p2 = pnand %p2391_p0, %p2388_p13 }
  0x5c   : > { %2396 = shalt.err (!%p2393_p2)
}
  0x5d   : > { %s2397_s22 = scalar_lea.vmem %s2727_s25, 2048  ;;  %p2405_p4 = scmp.lt.s32.totalorder %s2727_s25, %s2727_s25 }
  0x5e   : > { %p2398_p5 = scmp.ne.s32.totalorder %s2727_s25, %s2397_s22  ;;  %p2406_p10 = scmp.lt.s32.totalorder %s2397_s22, %s2397_s22 }
  0x60   : > { %p2400_p7 = pnand %p2398_p5, %p2737_p8  ;;  %p2407_p11 = por %p2406_p10, %p2405_p4 }
  0x62   : > { %p2401_p9 = pneg %p2400_p7 }
  0x64   : > { %p2408_p12 = pnand %p2407_p11, %p2401_p9 }
  0x66   : > { %2411 = shalt.err (!%p2408_p12)
}
  0x67   : > { %s2617_s18 = smov 128   ;;  %s2618_s9 = smov 8  }
  0x68   : > { %2177 = dma.hbm_to_vmem [thread:$0]  (!%p2721_p6), %s3206_s5, 2048, %s2727_s25, [#allocation12], %s2617_s18, %s2617_s18, %s2618_s9  }
  0x69   : > { %s2619_s28 = smov [#allocation10]   ;;  %s2620_s30 = smov [#allocation13]  }
  0x6a   : > { %s320_s29 = sshll.u32 %s2619_s28, 4  ;;  %s346_s12 = sshll.u32 %s2620_s30, 4  ;;  %s321_s29 = int_to_ptr.vmem [resolvable:$true] %s320_s29  ;;  %s347_s12 = int_to_ptr.vmem [resolvable:$true] %s346_s12 }
  0x6b   : > { %s3207_s4 = sld [smem:[#allocation23_spill]] }
  0x71   : > { %s2412_s22 = scalar_lea.hbm %s3207_s4, 1024 }
  0x72   : > { %p2413_p13 = scmp.ne.s32.totalorder %s3207_s4, %s2412_s22  ;;  %p2419_p5 = scmp.lt.u32.totalorder %s2412_s22, %s3207_s4 }
  0x74   : > { %p2415_p0 = pnand %p2413_p13, %p2737_p8 }
  0x76   : > { %p2416_p2 = pneg %p2415_p0 }
  0x78   : > { %p2421_p7 = pnand %p2419_p5, %p2416_p2 }
  0x7a   : > { %2424 = shalt.err (!%p2421_p7)
}
  0x7b   : > { %s2425_s25 = scalar_lea.vmem %s321_s29, 1024  ;;  %p2433_p11 = scmp.lt.s32.totalorder %s321_s29, %s321_s29 }
  0x7c   : > { %p2426_p9 = scmp.ne.s32.totalorder %s321_s29, %s2425_s25  ;;  %p2434_p12 = scmp.lt.s32.totalorder %s2425_s25, %s2425_s25 }
  0x7e   : > { %p2428_p4 = pnand %p2426_p9, %p2737_p8  ;;  %p2435_p1 = por %p2434_p12, %p2433_p11 }
  0x80   : > { %p2429_p10 = pneg %p2428_p4 }
  0x82   : > { %p2436_p3 = pnand %p2435_p1, %p2429_p10 }
  0x84   : > { %2439 = shalt.err (!%p2436_p3)
}
  0x85   : > { %s3208_s24 = smov 4   ;;  %s3209_s26 = smov 64  }
  0x86   : > { %2174 = dma.hbm_to_vmem [thread:$0]  (!%p2721_p6), %s3207_s4, 1024, %s321_s29, [#allocation9], %s3209_s26, %s3209_s26, %s3208_s24  }
  0x87   : > { %s3210_s6 = sld [smem:[#allocation25_spill]] }
  0x8d   : > { %s2440_s28 = scalar_lea.hbm %s3210_s6, 2048 }
  0x8e   : > { %p2441_p1 = scmp.ne.s32.totalorder %s3210_s6, %s2440_s28  ;;  %p2447_p0 = scmp.lt.u32.totalorder %s2440_s28, %s3210_s6 }
  0x90   : > { %p2443_p3 = pnand %p2441_p1, %p2737_p8 }
  0x92   : > { %p2444_p13 = pneg %p2443_p3 }
  0x94   : > { %p2449_p2 = pnand %p2447_p0, %p2444_p13 }
  0x96   : > { %2452 = shalt.err (!%p2449_p2)
}
  0x97   : > { %s2453_s25 = scalar_lea.vmem %s347_s12, 2048  ;;  %p2461_p4 = scmp.lt.s32.totalorder %s347_s12, %s347_s12 }
  0x98   : > { %p2454_p5 = scmp.ne.s32.totalorder %s347_s12, %s2453_s25  ;;  %p2462_p10 = scmp.lt.s32.totalorder %s2453_s25, %s2453_s25 }
  0x9a   : > { %p2456_p7 = pnand %p2454_p5, %p2737_p8  ;;  %p2463_p11 = por %p2462_p10, %p2461_p4 }
  0x9c   : > { %p2457_p9 = pneg %p2456_p7 }
  0x9e   : > { %p2464_p12 = pnand %p2463_p11, %p2457_p9 }
  0xa0   : > { %2467 = shalt.err (!%p2464_p12)
}
  0xa1   : > { %2180 = dma.hbm_to_vmem [thread:$0]  (!%p2721_p6), %s3210_s6, 2048, %s347_s12, [#allocation12], %s2617_s18, %s2617_s18, %s2618_s9  }
  0xa2   : > { %s1661_s23 = sadd.s32 4294967294, %s2610_s16   ;;  %s2857_s11 = sadd.s32 1, %s2610_s16  }
  0xa3   : > { %s38_s26 = sadd.s32 1, %s2606_s15  ;;  %s35_s2 = ssub.s32 %s2610_s16, %s2857_s11 }
  0xa4   : > { %p45_p8 = scmp.ne.s32.totalorder %s2606_s15, %s2602_s14  ;;  %p36_p1 = scmp.eq.s32.totalorder %s35_s2, 0 }
  0xa5   : > { %p46_p3 = scmp.eq.s32.totalorder %s2610_s16, 0  ;;  %p51_p13 = scmp.ne.s32.totalorder %s2602_s14, %s2598_s13 }
  0xa6   : > { %p269_p0 = scmp.eq.s32.totalorder %s2705_s19, 1  ;;  %p3211_p5 = scmp.eq.s32.totalorder %s2705_s19, 0 }
  0xa7   : > { %s2869_s3 = scalar_select %p36_p1, %s2606_s15, %s38_s26  }
  0xa8   : > { %p47_p2 = por %p46_p3, %p45_p8  ;;  %p2873_p7 = por %p3211_p5, %p51_p13 }
  0xa9   : > { %p2877_p6 = por %p269_p0, %p45_p8  ;;  %p275_p9 = scmp.eq.s32.totalorder %s1661_s23, 1 }
  0xaa   : > { %s3212_s10 = scalar_select %p2873_p7, 1, 0 }
  0xab   : > { %s3213_s18 = scalar_select %p2877_p6, 1, 0 }
  0xac   : > { %p2197_p4 = scmp.lt.s32.totalorder %s2610_s16, 2  ;;  %s369_s9 = sand.u32 1, %s2606_s15  }
  0xad   : > { %p2883_p10 = por %p275_p9, %p51_p13  ;;  %s2887_s27 = sshll.u32 %s369_s9, 3 }
  0xae   : > { %s1759_s28 = sshll.u32 %s2610_s16, 7  ;;  %s373_s22 = scalar_lea.vmem [#allocation2], %s2887_s27 }
  0xaf   : > { %s3214_s12 = scalar_select %p2883_p10, 1, 0 }
  0xb0   : > { %s2893_s21 = scalar_lea.hbm %s3175_s0, %s1759_s28  ;;  %s381_s25 = sshll.u32 %s373_s22, 4  ;;  %s2900_s25 = int_to_ptr.vmem [resolvable:$true] %s381_s25 }
  0xb1   : > { %p2896_p11 = pnand %p2197_p4, %p47_p2  ;;  %s2905_s26 = scalar_lea.hbm %s3176_s1, %s1759_s28 }
  0xb2   : > { %s370_s2 = scalar_lea.sflag [#allocation3], %s369_s9  ;;  %s2468_s30 = scalar_lea.hbm %s2893_s21, 128 }
  0xb3   : > { %p2469_p12 = scmp.ne.s32.totalorder %s2893_s21, %s2468_s30  ;;  %p2470_p8 = pneg %p2896_p11 }
  0xb4   : > { %s2473_s4 = scalar_lea.hbm %s3175_s0, 256  ;;  %p2474_p13 = scmp.lt.u32.totalorder %s2893_s21, %s3175_s0 }
  0xb5   : > { %p2471_p1 = pnand %p2470_p8, %p2469_p12  ;;  %p2475_p0 = scmp.lt.u32.totalorder %s2473_s4, %s2468_s30 }
  0xb6   : > { %p2477_p5 = scmp.lt.u32.totalorder %s2468_s30, %s2893_s21 }
  0xb7   : > { %p2472_p3 = pneg %p2471_p1  ;;  %p2476_p2 = por %p2475_p0, %p2474_p13 }
  0xb9   : > { %p2478_p9 = por %p2477_p5, %p2476_p2 }
  0xbb   : > { %p2479_p4 = pnand %p2478_p9, %p2472_p3 }
  0xbd   : > { %2482 = shalt.err (!%p2479_p4)
}
  0xbe   : > { %s2483_s9 = scalar_lea.vmem %s2900_s25, 128  ;;  %s2621_s28 = smov [#allocation2]  }
  0xbf   : > { %p2484_p12 = scmp.ne.s32.totalorder %s2900_s25, %s2483_s9  ;;  %s2488_s24 = sshll.u32 %s2621_s28, 4  ;;  %s2489_s24 = int_to_ptr.vmem [resolvable:$false] %s2488_s24 }
  0xc0   : > { %s2490_s5 = scalar_lea.vmem %s2489_s24, 256  ;;  %p2491_p6 = scmp.lt.s32.totalorder %s2900_s25, %s2489_s24 }
  0xc1   : > { %p2486_p1 = pnand %p2484_p12, %p2470_p8  ;;  %p2492_p13 = scmp.lt.s32.totalorder %s2490_s5, %s2483_s9 }
  0xc3   : > { %p2487_p10 = pneg %p2486_p1  ;;  %p2493_p0 = por %p2492_p13, %p2491_p6 }
  0xc5   : > { %p2494_p2 = pnand %p2493_p0, %p2487_p10 }
  0xc7   : > { %2497 = shalt.err (!%p2494_p2)
}
  0xc8   : > { %2184 = dma.hbm_to_vmem [thread:$0]  (!%p2896_p11), %s2893_s21, 128, %s2900_s25, %s370_s2  }
  0xc9   : > { %s388_s4 = sand.u32 1, %s2610_s16   ;;  %s392_s6 = scalar_lea.vmem [#allocation5], %s2887_s27 }
  0xca   : > { %s400_s23 = sshll.u32 %s392_s6, 4  ;;  %s389_s30 = scalar_lea.sflag [#allocation6], %s388_s4  ;;  %s401_s23 = int_to_ptr.vmem [resolvable:$true] %s400_s23 }
  0xcb   : > { %s2498_s17 = scalar_lea.hbm %s2905_s26, 128  ;;  %s2503_s28 = scalar_lea.hbm %s3176_s1, 256 }
  0xcc   : > { %p2499_p6 = scmp.ne.s32.totalorder %s2905_s26, %s2498_s17  ;;  %p2504_p5 = scmp.lt.u32.totalorder %s2905_s26, %s3176_s1 }
  0xcd   : > { %p2505_p9 = scmp.lt.u32.totalorder %s2503_s28, %s2498_s17  ;;  %p2507_p12 = scmp.lt.u32.totalorder %s2498_s17, %s2905_s26 }
  0xce   : > { %p2501_p10 = pnand %p2499_p6, %p2470_p8 }
  0xcf   : > { %p2506_p4 = por %p2505_p9, %p2504_p5 }
  0xd0   : > { %p2502_p3 = pneg %p2501_p10 }
  0xd1   : > { %p2508_p1 = por %p2507_p12, %p2506_p4 }
  0xd3   : > { %p2509_p13 = pnand %p2508_p1, %p2502_p3 }
  0xd5   : > { %2512 = shalt.err (!%p2509_p13)
}
  0xd6   : > { %s2513_s27 = scalar_lea.vmem %s401_s23, 128  ;;  %s2622_s21 = smov [#allocation5]  }
  0xd7   : > { %p2514_p0 = scmp.ne.s32.totalorder %s401_s23, %s2513_s27  ;;  %s2518_s25 = sshll.u32 %s2622_s21, 4  ;;  %s2519_s25 = int_to_ptr.vmem [resolvable:$false] %s2518_s25 }
  0xd8   : > { %s2520_s2 = scalar_lea.vmem %s2519_s25, 256  ;;  %p2521_p10 = scmp.lt.s32.totalorder %s401_s23, %s2519_s25 }
  0xd9   : > { %p2516_p2 = pnand %p2514_p0, %p2470_p8  ;;  %p2522_p7 = scmp.lt.s32.totalorder %s2520_s2, %s2513_s27 }
  0xdb   : > { %p2517_p6 = pneg %p2516_p2  ;;  %p2523_p5 = por %p2522_p7, %p2521_p10 }
  0xdd   : > { %p2524_p9 = pnand %p2523_p5, %p2517_p6 }
  0xdf   : > { %2527 = shalt.err (!%p2524_p9)
}
  0xe0   : > { %2187 = dma.hbm_to_vmem [thread:$0]  (!%p2896_p11), %s2905_s26, 128, %s401_s23, %s389_s30  }
  0xe1   : > { %p3216_p3 = scmp.ne.s32.totalorder %s3201_s20, 0 }
  0xe2   : > { %s2956_s4 = sand.u32 (!%p3216_p3), 1, %s2602_s14   ;;  %p3217_p7 = scmp.ne.s32.totalorder (!%p3216_p3), %s3212_s10, 0 }
  0xe3   : > { %409 = sbr.rel (%p3216_p3) target bundleno = 1749 (0x6d5), region = 60  ;;  %s1676_s6 = sshll.u32 (!%p3216_p3), %s2956_s4, 3 }
  0xe4   : > { %s412_s17 = scalar_lea.sflag (!%p3216_p3), [#allocation3], %s2956_s4  ;;  %s2960_s22 = scalar_lea.vmem (!%p3216_p3), [#allocation2], %s1676_s6 }
  0xea   : > { %2573 = dma.done.wait (%p3217_p7), %s412_s17, 128  }
  0xeb   : > { %2575 = vsyncadd (%p3217_p7), %s412_s17, 4294967168  ;;  %s420_s29 = sand.u32 1, %s2705_s19   ;;  %s2967_s26 = scalar_lea.vmem [#allocation5], %s1676_s6 }
  0xec   : > { %s421_s20 = scalar_lea.sflag [#allocation6], %s420_s29 }
  0xed   : > { %2577 = dma.done.wait (%p3217_p7), %s421_s20, 128  }
  0xee   : > { %2579 = vsyncadd (%p3217_p7), %s421_s20, 4294967168  ;;  %p3218_p11 = scmp.eq.s32.totalorder %s2705_s19, 0 }
  0xf0   : > { %2581 = dma.done.wait (%p3218_p11), [#allocation6], 2048   ;;  %p3219_p8 = pmov %p3218_p11 }
  0xf2   : > { %2583 = vsyncadd (%p3219_p8), [#allocation6], 4294965248  ;;  %p3220_p4 = pmov %p3219_p8 }
  0xf4   : > { %2585 = dma.done.wait (%p3220_p4), [#allocation9], 3072   ;;  %p3221_p12 = pmov %p3220_p4 }
  0xf5   : > { %p3222_p1 = pmov %p3220_p4 }
  0xf6   : > { %2587 = vsyncadd (%p3221_p12), [#allocation9], 4294964224 }
  0xf7   : > { %2589 = dma.done.wait (%p3222_p1), [#allocation12], 4096   ;;  %p3223_p13 = pmov %p3222_p1 }
  0xf8   : > { %v2250_v0 = vld [vmem:[#allocation7 + $0x40] sm:$0xff]   ;;  %v2254_v4 = vld [vmem:[#allocation7 + $0x48] sm:$0xff]   ;;  %v2258_v8 = vld [vmem:[#allocation7 + $0x50] sm:$0xff]   ;;  %v2623_v39 = vmov 0.0   ;;  %vm2624_vm0 = vmmov 0   ;;  %v2625_v50 = vmov 0.0|0.0  }
  0xf9   : > { %2591 = vsyncadd (%p3223_p13), [#allocation12], 4294963200  ;;  %v2251_v1 = vld [vmem:[#allocation8 + $0x40] sm:$0xff]   ;;  %1762 = vmatprep.subr.bf16.mxu0 %v2250_v0  ;;  %v2255_v5 = vld [vmem:[#allocation8 + $0x48] sm:$0xff]   ;;  %s2626_s28 = smov 64   ;;  %s3224_s10 = sld [smem:[#allocation26_spill]] }
  0xfa   : > { %v2252_v2 = vld [vmem:[#allocation7] sm:$0xff]   ;;  %1784 = vmatprep.subr.bf16.mxu1 %v2251_v1  ;;  %v2256_v6 = vld [vmem:[#allocation7 + $0x8] sm:$0xff]   ;;  %v2259_v9 = vld [vmem:[#allocation8 + $0x50] sm:$0xff]   ;;  %s1683_s24 = sshll.u32 %s2956_s4, 4  ;;  %s1761_s5 = sshll.u32 %s2705_s19, 8 }
  0xfb   : > { %v2253_v3 = vld [vmem:[#allocation8] sm:$0xff]   ;;  %1763 = vmatpush3.bf16.msra.mxu0 %v2252_v2  ;;  %v2257_v7 = vld [vmem:[#allocation8 + $0x8] sm:$0xff]   ;;  %v2260_v10 = vld [vmem:[#allocation7 + $0x10] sm:$0xff]   ;;  %s485_s27 = scalar_lea.vmem [#allocation14], %s1683_s24  ;;  %s3225_s6 = sld [smem:[#allocation27_spill]] }
  0xfc   : > { %1785 = vmatpush3.bf16.msra.mxu1 %v2253_v3  ;;  %1764 = vmatprep.subr.bf16.mxu0 %v2254_v4  ;;  %v2261_v11 = vld [vmem:[#allocation8 + $0x10] sm:$0xff]   ;;  %v2262_v12 = vld [vmem:[#allocation7 + $0x58] sm:$0xff]   ;;  %v2266_v16 = vld [vmem:[#allocation7 + $0x60] sm:$0xff]   ;;  %s1521_s21 = sshll.u32 %s485_s27, 4  ;;  %p3226_p2 = scmp.ne.s32.totalorder %s3213_s18, 0  ;;  %s3133_s21 = int_to_ptr.vmem [resolvable:$true] %s1521_s21 }
  0xfd   : > { %1786 = vmatprep.subr.bf16.mxu1 %v2255_v5  ;;  %v2263_v13 = vld [vmem:[#allocation8 + $0x58] sm:$0xff]   ;;  %v2267_v17 = vld [vmem:[#allocation8 + $0x60] sm:$0xff]   ;;  %v2270_v20 = vld [vmem:[#allocation7 + $0x68] sm:$0xff]   ;;  %s2528_s19 = scalar_lea.vmem %s3133_s21, 256  ;;  %s2628_s29 = smov [#allocation14]  }
  0xfe   : > { %v2264_v14 = vld [vmem:[#allocation7 + $0x18] sm:$0xff]   ;;  %v2268_v18 = vld [vmem:[#allocation7 + $0x20] sm:$0xff]   ;;  %v2271_v21 = vld [vmem:[#allocation8 + $0x68] sm:$0xff]   ;;  %p2529_p0 = scmp.ne.s32.totalorder %s3133_s21, %s2528_s19  ;;  %s2532_s20 = sshll.u32 %s2628_s29, 4  ;;  %s2533_s20 = int_to_ptr.vmem [resolvable:$false] %s2532_s20 }
  0xff   : > { %1765 = vmatpush3.bf16.msra.mxu0 %v2256_v6  ;;  %v2265_v15 = vld [vmem:[#allocation8 + $0x18] sm:$0xff]   ;;  %v2269_v19 = vld [vmem:[#allocation8 + $0x20] sm:$0xff]   ;;  %v2272_v22 = vld [vmem:[#allocation7 + $0x28] sm:$0xff]   ;;  %p2535_p5 = scmp.lt.s32.totalorder %s3133_s21, %s2533_s20 }
 0x100   : > { %1787 = vmatpush3.bf16.msra.mxu1 %v2257_v7  ;;  %1766 = vmatprep.subr.bf16.mxu0 %v2258_v8  ;;  %v2273_v23 = vld [vmem:[#allocation8 + $0x28] sm:$0xff]   ;;  %v2274_v24 = vld [vmem:[#allocation7 + $0x70] sm:$0xff]   ;;  %v2278_v28 = vld [vmem:[#allocation7 + $0x78] sm:$0xff]   ;;  %p2530_p6 = pnand %p2529_p0, %p3226_p2 }
 0x101   : > { %1788 = vmatprep.subr.bf16.mxu1 %v2259_v9  ;;  %v2275_v25 = vld [vmem:[#allocation8 + $0x70] sm:$0xff]   ;;  %v2279_v29 = vld [vmem:[#allocation8 + $0x78] sm:$0xff]   ;;  %v487_v32 = vld [vmem:[%s2960_s22] sm:$0xff]  ;;  %s3131_s17 = scalar_lea.hbm %s3225_s6, %s1761_s5  ;;  %s1507_s22 = scalar_lea.sflag [#allocation4], %s2956_s4 }
 0x102   : > { %v2276_v26 = vld [vmem:[#allocation7 + $0x30] sm:$0xff]   ;;  %v2280_v30 = vld [vmem:[#allocation7 + $0x38] sm:$0xff]   ;;  %v1685_v34 = vcombine.low %v487_v32, %v487_v32  ;;  %v1686_v35 = vcombine.high %v487_v32, %v487_v32  ;;  %v2286_v38 = vld [vmem:[#allocation10] sm:$0xff]   ;;  %p2531_p10 = pneg %p2530_p6 }
 0x103   : > { %1767 = vmatpush3.bf16.msra.mxu0 %v2260_v10  ;;  %v2277_v27 = vld [vmem:[#allocation8 + $0x30] sm:$0xff]   ;;  %v2281_v31 = vld [vmem:[#allocation8 + $0x38] sm:$0xff]   ;;  %v2287_v40 = vld [vmem:[#allocation10 + $0x8] sm:$0xff]  }
 0x104   : > { %1789 = vmatpush3.bf16.msra.mxu1 %v2261_v11  ;;  %1768 = vmatprep.subr.bf16.mxu0 %v2262_v12  ;;  %v488_v33 = vld [vmem:[%s2967_s26] sm:$0xff]  ;;  %v2290_v43 = vld [vmem:[#allocation10 + $0x20] sm:$0xff]   ;;  %v2291_v44 = vld [vmem:[#allocation10 + $0x28] sm:$0xff]   ;;  %s2534_s26 = scalar_lea.vmem %s2533_s20, 512 }
 0x105   : > { %1790 = vmatprep.subr.bf16.mxu1 %v2263_v13  ;;  %v1704_v36 = vcombine.low %v488_v33, %v488_v33  ;;  %v1705_v37 = vcombine.high %v488_v33, %v488_v33  ;;  %661 = vmatprep.mubr.bf16.mxu0 %v1686_v35  ;;  %v2288_v41 = vld [vmem:[#allocation10 + $0x10] sm:$0xff]   ;;  %v2289_v42 = vld [vmem:[#allocation10 + $0x18] sm:$0xff]   ;;  %v966_v47 = vld [vmem:[#allocation13] sm:$0xff]  ;;  %p2536_p9 = scmp.lt.s32.totalorder %s2534_s26, %s2528_s19 }
 0x106   : > { %v2292_v45 = vld [vmem:[#allocation10 + $0x30] sm:$0xff]   ;;  %v2293_v46 = vld [vmem:[#allocation10 + $0x38] sm:$0xff]   ;;  %v967_v48 = vld [vmem:[#allocation13 + $0x8] sm:$0xff] }
 0x107   : > { %1769 = vmatpush3.bf16.msra.mxu0 %v2264_v14  ;;  %841 = vmatprep.mubr.bf16.mxu1 %v1705_v37  ;;  %v968_v49 = vld [vmem:[#allocation13 + $0x10] sm:$0xff]  ;;  %v3000_v51 = vpack.c.bf16 %v967_v48, %v966_v47  ;;  %v969_v52 = vld [vmem:[#allocation13 + $0x18] sm:$0xff]  ;;  %v970_v54 = vld [vmem:[#allocation13 + $0x20] sm:$0xff]  ;;  %p2537_p3 = por %p2536_p9, %p2535_p5 }
 0x108   : > { %1791 = vmatpush3.bf16.msra.mxu1 %v2265_v15  ;;  %1770 = vmatprep.subr.bf16.mxu0 %v2266_v16  ;;  %v3004_v53 = vpack.c.bf16 %v969_v52, %v968_v49  ;;  %v971_v55 = vld [vmem:[#allocation13 + $0x28] sm:$0xff]  ;;  %v1703_v58 = vld [vmem:[%s3182_s7 + $0x1] ss:$0 sm:$0xff]  ;;  %v1684_v62 = vld [vmem:[%s3182_s7] ss:$0 sm:$0xff] }
 0x109   : > { %1792 = vmatprep.subr.bf16.mxu1 %v2267_v17  ;;  %v3011_v59 = vpack.c.bf16 %v971_v55, %v970_v54  ;;  %v972_v63 = vld [vmem:[#allocation13 + $0x30] sm:$0xff]  ;;  %v973_v0 = vld [vmem:[#allocation13 + $0x38] sm:$0xff]  ;;  %v974_v10 = vld [vmem:[#allocation13 + $0x40] sm:$0xff]  ;;  %p2538_p7 = pnand %p2537_p3, %p2531_p10 }
 0x10a   : > { %v3020_v9 = vpack.c.bf16 %v973_v0, %v972_v63  ;;  %v975_v11 = vld [vmem:[#allocation13 + $0x48] sm:$0xff]  ;;  %v976_v15 = vld [vmem:[#allocation13 + $0x50] sm:$0xff]  ;;  %v977_v16 = vld [vmem:[#allocation13 + $0x58] sm:$0xff] }
 0x10b   : > { %1771 = vmatpush3.bf16.msra.mxu0 %v2268_v18  ;;  %v3025_v14 = vpack.c.bf16 %v975_v11, %v974_v10  ;;  %v3032_v17 = vpack.c.bf16 %v977_v16, %v976_v15  ;;  %v978_v18 = vld [vmem:[#allocation13 + $0x60] sm:$0xff]  ;;  %v2305_v48 = vld [vmem:[#allocation11 + $0x34] ss:$8 sps:$4 sm:$0xff]   ;;  %v2303_v49 = vld [vmem:[#allocation11 + $0x30] ss:$8 sps:$4 sm:$0xff]  }
 0x10c   : > { %1793 = vmatpush3.bf16.msra.mxu1 %v2269_v19  ;;  %1772 = vmatprep.subr.bf16.mxu0 %v2270_v20  ;;  %v979_v19 = vld [vmem:[#allocation13 + $0x68] sm:$0xff]  ;;  %v2311_v52 = vld [vmem:[#allocation11 + $0x54] ss:$8 sps:$4 sm:$0xff]   ;;  %v1731_v0 = vld [vmem:[%s3183_s8] ss:$0 sm:$0xff] }
 0x10d   : > { %1794 = vmatprep.subr.bf16.mxu1 %v2271_v21  ;;  %v3038_v20 = vpack.c.bf16 %v979_v19, %v978_v18  ;;  %v980_v21 = vld [vmem:[#allocation13 + $0x70] sm:$0xff]  ;;  %v2300_v47 = vld [vmem:[#allocation11 + $0x20] ss:$8 sps:$4 sm:$0xff]   ;;  %v2314_v55 = vld [vmem:[#allocation11 + $0x64] ss:$8 sps:$4 sm:$0xff]  }
 0x10e   : > { %v2312_v54 = vld [vmem:[#allocation11 + $0x60] ss:$8 sps:$4 sm:$0xff]  }
 0x10f   : > { %1773 = vmatpush3.bf16.msra.mxu0 %v2272_v22  ;;  %v981_v22 = vld [vmem:[#allocation13 + $0x78] sm:$0xff]  ;;  %v1735_v15 = vld [vmem:[%s3183_s8 + $0x3] ss:$0 sm:$0xff] }
 0x110   : > { %1795 = vmatpush3.bf16.msra.mxu1 %v2273_v23  ;;  %1774 = vmatprep.subr.bf16.mxu0 %v2274_v24  ;;  %v3044_v23 = vpack.c.bf16 %v981_v22, %v980_v21  ;;  %v1722_v24 = vld [vmem:[%s3182_s7 + $0x2] ss:$0 sm:$0xff] }
 0x111   : > { %1796 = vmatprep.subr.bf16.mxu1 %v2275_v25 }
 0x113   : > { %1775 = vmatpush3.bf16.msra.mxu0 %v2276_v26 }
 0x114   : > { %1797 = vmatpush3.bf16.msra.mxu1 %v2277_v27  ;;  %1776 = vmatprep.subr.bf16.mxu0 %v2278_v28 }
 0x115   : > { %1798 = vmatprep.subr.bf16.mxu1 %v2279_v29 }
 0x117   : > { %1777 = vmatpush3.bf16.msra.mxu0 %v2280_v30  ;;  %v960_v30 = vlaneseq }
 0x118   : > { %1799 = vmatpush3.bf16.msra.mxu1 %v2281_v31  ;;  %1883 = vmatprep.subr.bf16.mxu0 %v2623_v39 }
 0x119   : > { %2043 = vmatprep.subr.bf16.mxu1 %v2625_v50  ;;  %v961_v31 = vand.u32 127, %v960_v30  ;;  %v1325_v21 = vshrl.u32 %v960_v30, 7 }
 0x11a   : > { %662 = vmatmul.mubr.bf16.vlgmr.msra.gmra.mrb[0].mxu0 %v1685_v34 }
 0x11b   : > { %842 = vmatmul.mubr.bf16.vlgmr.msra.gmra.mrb[0].mxu1 %v1704_v36  ;;  %1884 = vmatpush3.bf16.msra.mxu0 %v2286_v38  ;;  %vm962_vm1 = vcmp.lt.s32.totalorder %v961_v31, 64  ;;  %v1326_v22 = vsub.s32 0, %v1325_v21 }
 0x11c   : > { %1885 = vmatprep.subr.bf16.mxu0 %v2623_v39  ;;  %1899 = vmatprep.mubr.msk.bf16.mxu0 %vm2624_vm0, %v2623_v39 }
 0x11d   : > { %1935 = vmatprep.mubr.msk.f32.mxu1 %vm2624_vm0, %v2623_v39  ;;  %2045 = vmatpush3.bf16.msra.mxu1 %v3000_v51 }
 0x11e   : > { %2046 = vmatprep.subr.bf16.mxu1 %v2625_v50 }
 0x11f   : > { %1886 = vmatpush3.bf16.msra.mxu0 %v2287_v40 }
 0x120   : > { %1887 = vmatprep.subr.bf16.mxu0 %v2623_v39 }
 0x121   : > { %2048 = vmatpush3.bf16.msra.mxu1 %v3004_v53 }
 0x122   : > { %2049 = vmatprep.subr.bf16.mxu1 %v2625_v50 }
 0x123   : > { %1888 = vmatpush3.bf16.msra.mxu0 %v2288_v41 }
 0x124   : > { %1889 = vmatprep.subr.bf16.mxu0 %v2623_v39 }
 0x125   : > { %2051 = vmatpush3.bf16.msra.mxu1 %v3011_v59 }
 0x126   : > { %2052 = vmatprep.subr.bf16.mxu1 %v2625_v50 }
 0x127   : > { %1890 = vmatpush3.bf16.msra.mxu0 %v2289_v42  ;;  %v2294_v42 = vld [vmem:[#allocation11] ss:$8 sps:$4 sm:$0xff]  }
 0x128   : > { %1891 = vmatprep.subr.bf16.mxu0 %v2623_v39 }
 0x129   : > { %2054 = vmatpush3.bf16.msra.mxu1 %v3020_v9 }
 0x12a   : > { %2055 = vmatprep.subr.bf16.mxu1 %v2625_v50 }
 0x12b   : > { %1892 = vmatpush3.bf16.msra.mxu0 %v2290_v43  ;;  %v2296_v43 = vld [vmem:[#allocation11 + $0x4] ss:$8 sps:$4 sm:$0xff]  }
 0x12c   : > { %1893 = vmatprep.subr.bf16.mxu0 %v2623_v39 }
 0x12d   : > { %2057 = vmatpush3.bf16.msra.mxu1 %v3025_v14 }
 0x12e   : > { %2058 = vmatprep.subr.bf16.mxu1 %v2625_v50 }
 0x12f   : > { %1894 = vmatpush3.bf16.msra.mxu0 %v2291_v44  ;;  %v2299_v44 = vld [vmem:[#allocation11 + $0x14] ss:$8 sps:$4 sm:$0xff]  }
 0x130   : > { %1895 = vmatprep.subr.bf16.mxu0 %v2623_v39 }
 0x131   : > { %2060 = vmatpush3.bf16.msra.mxu1 %v3032_v17 }
 0x132   : > { %2061 = vmatprep.subr.bf16.mxu1 %v2625_v50 }
 0x133   : > { %1896 = vmatpush3.bf16.msra.mxu0 %v2292_v45  ;;  %v2297_v45 = vld [vmem:[#allocation11 + $0x10] ss:$8 sps:$4 sm:$0xff]  }
 0x134   : > { %1897 = vmatprep.subr.bf16.mxu0 %v2623_v39 }
 0x135   : > { %2063 = vmatpush3.bf16.msra.mxu1 %v3038_v20 }
 0x136   : > { %2064 = vmatprep.subr.bf16.mxu1 %v2625_v50 }
 0x137   : > { %1898 = vmatpush3.bf16.msra.mxu0 %v2293_v46  ;;  %v2302_v46 = vld [vmem:[#allocation11 + $0x24] ss:$8 sps:$4 sm:$0xff]  }
 0x138   : > { %2067 = vmatprep.subr.bf16.mxu0 %v2625_v50 }
 0x139   : > { %2066 = vmatpush3.bf16.msra.mxu1 %v3044_v23 }
 0x13a   : > { %2091 = vmatprep.subr.bf16.mxu1 %v2625_v50 }
 0x1ed   : > { %v1778_v56 = vpop.f32.mrb[0].mxu0 }
 0x1ee   : > { %v1800_v57 = vpop.f32.mrb[0].mxu1  ;;  %v1779_v60 = vpop.f32.mrb[1].mxu0 }
 0x1ef   : > { %v1801_v61 = vpop.f32.mrb[1].mxu1  ;;  %v1780_v1 = vadd.f32 %v1779_v60, %v1778_v56  ;;  %v1781_v3 = vpop.f32.mrb[2].mxu0  ;;  %v2317_v56 = vld [vmem:[#allocation11 + $0x74] ss:$8 sps:$4 sm:$0xff]  }
 0x1f0   : > { %v1802_v2 = vadd.f32 %v1801_v61, %v1800_v57  ;;  %v1803_v4 = vpop.f32.mrb[2].mxu1  ;;  %v1782_v5 = vpop.f32.mrb[3].mxu0  ;;  %v2627_v57 = vmov 0  }
 0x1f1   : > { %v1804_v6 = vpop.f32.mrb[3].mxu1  ;;  %v664_v8 = vadd.f32 %v1780_v1, %v1684_v62 }
 0x1f2   : > { %v3017_v7 = vadd.f32 %v1802_v2, %v1703_v58  ;;  %v2315_v58 = vld [vmem:[#allocation11 + $0x70] ss:$8 sps:$4 sm:$0xff]   ;;  %v1732_v2 = vld [vmem:[%s3183_s8 + $0x1] ss:$0 sm:$0xff] }
 0x1f3   : > { %963 = vrot.lane.b32.xlu0 %v664_v8, %s2626_s28 }
 0x1f4   : > { %v849_v12 = vmul.f32 %v3017_v7, %v664_v8 }
 0x1f6   : > { %v850_v13 = vpack.c.bf16 %v849_v12, %v849_v12 }
 0x1f8   : > { %1900 = vmatmul.mubr.bf16.vlgmr.msra.gmra.mrb[4].mxu0 %v850_v13  ;;  %v1734_v13 = vld [vmem:[%s3183_s8 + $0x2] ss:$0 sm:$0xff] }
 0x1f9   : > { %2069 = vmatpush3.bf16.msra.mxu0 %v3000_v51  ;;  %1970 = vmatprep.mubr.msk.f32.mxu0 %vm2624_vm0, %v2623_v39 }
 0x1fa   : > { %2070 = vmatprep.subr.bf16.mxu0 %v2625_v50 }
 0x1fd   : > { %2072 = vmatpush3.bf16.msra.mxu0 %v3004_v53 }
 0x1fe   : > { %2073 = vmatprep.subr.bf16.mxu0 %v2625_v50 }
 0x201   : > { %2075 = vmatpush3.bf16.msra.mxu0 %v3011_v59 }
 0x202   : > { %2076 = vmatprep.subr.bf16.mxu0 %v2625_v50 }
 0x205   : > { %2078 = vmatpush3.bf16.msra.mxu0 %v3020_v9 }
 0x206   : > { %2079 = vmatprep.subr.bf16.mxu0 %v2625_v50 }
 0x209   : > { %2081 = vmatpush3.bf16.msra.mxu0 %v3025_v14 }
 0x20a   : > { %2082 = vmatprep.subr.bf16.mxu0 %v2625_v50 }
 0x20d   : > { %2084 = vmatpush3.bf16.msra.mxu0 %v3032_v17 }
 0x20e   : > { %2085 = vmatprep.subr.bf16.mxu0 %v2625_v50 }
 0x211   : > { %2087 = vmatpush3.bf16.msra.mxu0 %v3038_v20 }
 0x212   : > { %2088 = vmatprep.subr.bf16.mxu0 %v2625_v50 }
 0x215   : > { %2090 = vmatpush3.bf16.msra.mxu0 %v3044_v23 }
 0x216   : > { %2115 = vmatprep.subr.bf16.mxu0 %v2625_v50 }
 0x265   : > { %v964_v32 = vpop.permute.xlu0 %963 }
 0x266   : > { %v965_v33 = vsel %vm962_vm1, %v964_v32, %v3017_v7 }
 0x2cb   : > { %v954_v25 = vpop.f32.mrb[4].mxu0 }
 0x2cc   : > { %v955_v26 = vadd.f32 %v1722_v24, %v954_v25  ;;  %v1901_v27 = vpop.f32.mrb[5].mxu0  ;;  %v1330_v24 = vsub.s32 1, %v1325_v21 }
 0x2cd   : > { %v957_v28 = vpop.f32.mrb[6].mxu0 }
 0x2ce   : > { %v1902_v29 = vpop.f32.mrb[7].mxu0  ;;  %1936 = vmatmul.mubr.f32.vlgmr.msra.gmra.mrb[4].mxu1 %v955_v26 }
 0x2cf   : > { %2093 = vmatpush3.bf16.msra.mxu1 %v3000_v51  ;;  %2005 = vmatprep.mubr.msk.f32.mxu1 %vm2624_vm0, %v2623_v39 }
 0x2d0   : > { %2094 = vmatprep.subr.bf16.mxu1 %v2625_v50 }
 0x2d3   : > { %2096 = vmatpush3.bf16.msra.mxu1 %v3004_v53 }
 0x2d4   : > { %2097 = vmatprep.subr.bf16.mxu1 %v2625_v50 }
 0x2d7   : > { %2099 = vmatpush3.bf16.msra.mxu1 %v3011_v59 }
 0x2d8   : > { %2100 = vmatprep.subr.bf16.mxu1 %v2625_v50 }
 0x2db   : > { %2102 = vmatpush3.bf16.msra.mxu1 %v3020_v9 }
 0x2dc   : > { %2103 = vmatprep.subr.bf16.mxu1 %v2625_v50 }
 0x2df   : > { %2105 = vmatpush3.bf16.msra.mxu1 %v3025_v14 }
 0x2e0   : > { %2106 = vmatprep.subr.bf16.mxu1 %v2625_v50 }
 0x2e3   : > { %2108 = vmatpush3.bf16.msra.mxu1 %v3032_v17 }
 0x2e4   : > { %2109 = vmatprep.subr.bf16.mxu1 %v2625_v50 }
 0x2e7   : > { %2111 = vmatpush3.bf16.msra.mxu1 %v3038_v20 }
 0x2e8   : > { %2112 = vmatprep.subr.bf16.mxu1 %v2625_v50 }
 0x2eb   : > { %2114 = vmatpush3.bf16.msra.mxu1 %v3044_v23 }
 0x2ec   : > { %1414 = vmatprep.subr.bf16.mxu1 %v2296_v43 }
 0x2ee   : > { %2006 = vmatmul.mubr.f32.vlgmr.msra.gmra.mrb[6].mxu1 %v965_v33 }
 0x2ef   : > { %1415 = vmatpush1.bf16.msra.mxu1 %v2294_v42  ;;  %1446 = vmatprep.mubr.bf16.mxu1 %v2627_v57 }
 0x2f0   : > { %1416 = vmatprep.subr.bf16.mxu1 %v2299_v44  ;;  %v1752_v44 = vld [vmem:[%s3224_s10 + $0x1] ss:$4 sm:$0x3] }
 0x2f3   : > { %1417 = vmatpush1.bf16.msra.mxu1 %v2297_v45  ;;  %v1753_v45 = vld [vmem:[%s3224_s10 + $0x2] ss:$4 sm:$0x3] }
 0x2f4   : > { %1418 = vmatprep.subr.bf16.mxu1 %v2302_v46  ;;  %v1478_v46 = vrot.slane %v1752_v44, %v1326_v22 }
 0x2f7   : > { %1419 = vmatpush1.bf16.msra.mxu1 %v2300_v47  ;;  %v1482_v47 = vrot.slane %v1752_v44, %v1330_v24 }
 0x2f8   : > { %1420 = vmatprep.subr.bf16.mxu1 %v2305_v48 }
 0x2fb   : > { %1421 = vmatpush1.bf16.msra.mxu1 %v2303_v49  ;;  %v1493_v49 = vrot.slane %v1753_v45, %v1326_v22 }
 0x3a1   : > { %v1050_v34 = vpop.f32.mrb[4].mxu1 }
 0x3a2   : > { %v3082_v35 = vsub.f32 %v955_v26, %v1050_v34  ;;  %v1937_v36 = vpop.f32.mrb[5].mxu1 }
 0x3a4   : > { %v1055_v37 = vmul.f32 %v3082_v35, %v3082_v35 }
 0x3a6   : > { %1971 = vmatmul.mubr.f32.vlgmr.msra.gmra.mrb[8].mxu0 %v1055_v37 }
 0x3a7   : > { %2117 = vmatpush3.bf16.msra.mxu0 %v3000_v51  ;;  %2040 = vmatprep.mubr.msk.f32.mxu0 %vm2624_vm0, %v2623_v39  ;;  %v2306_v51 = vld [vmem:[#allocation11 + $0x40] ss:$8 sps:$4 sm:$0xff]  }
 0x3a8   : > { %2118 = vmatprep.subr.bf16.mxu0 %v2625_v50 }
 0x3ab   : > { %2120 = vmatpush3.bf16.msra.mxu0 %v3004_v53  ;;  %v2309_v53 = vld [vmem:[#allocation11 + $0x50] ss:$8 sps:$4 sm:$0xff]  }
 0x3ac   : > { %2121 = vmatprep.subr.bf16.mxu0 %v2625_v50 }
 0x3af   : > { %2123 = vmatpush3.bf16.msra.mxu0 %v3011_v59 }
 0x3b0   : > { %2124 = vmatprep.subr.bf16.mxu0 %v2625_v50 }
 0x3b3   : > { %2126 = vmatpush3.bf16.msra.mxu0 %v3020_v9 }
 0x3b4   : > { %2127 = vmatprep.subr.bf16.mxu0 %v2625_v50 }
 0x3b7   : > { %2129 = vmatpush3.bf16.msra.mxu0 %v3025_v14 }
 0x3b8   : > { %2130 = vmatprep.subr.bf16.mxu0 %v2625_v50 }
 0x3bb   : > { %2132 = vmatpush3.bf16.msra.mxu0 %v3032_v17 }
 0x3bc   : > { %2133 = vmatprep.subr.bf16.mxu0 %v2625_v50 }
 0x3bf   : > { %2135 = vmatpush3.bf16.msra.mxu0 %v3038_v20 }
 0x3c0   : > { %2136 = vmatprep.subr.bf16.mxu0 %v2625_v50  ;;  %v2308_v50 = vld [vmem:[#allocation11 + $0x44] ss:$8 sps:$4 sm:$0xff]  }
 0x3c1   : > { %v1214_v38 = vpop.f32.mrb[6].mxu1  ;;  %1422 = vmatprep.subr.bf16.mxu1 %v2308_v50  ;;  %v1497_v50 = vrot.slane %v1753_v45, %v1330_v24 }
 0x3c2   : > { %v1218_v39 = vsub.f32 %v965_v33, %v1214_v38  ;;  %v2007_v40 = vpop.f32.mrb[7].mxu1  ;;  %1423 = vmatpush1.bf16.msra.mxu1 %v2306_v51 }
 0x3c3   : > { %2138 = vmatpush3.bf16.msra.mxu0 %v3044_v23  ;;  %1424 = vmatprep.subr.bf16.mxu1 %v2311_v52  ;;  %v1322_v23 = vld [vmem:[%s3224_s10] ss:$4 sm:$0x3] }
 0x3c4   : > { %v1219_v41 = vmul.f32 %v1218_v39, %v1218_v39  ;;  %v1327_v25 = vrot.slane %v1322_v23, %v1326_v22  ;;  %v1331_v26 = vrot.slane %v1322_v23, %v1330_v24 }
 0x3c6   : > { %2041 = vmatmul.mubr.f32.vlgmr.msra.gmra.mrb[10].mxu0 %v1219_v41  ;;  %1425 = vmatpush1.bf16.msra.mxu1 %v2309_v53 }
 0x3c7   : > { %1426 = vmatprep.subr.bf16.mxu1 %v2314_v55 }
 0x3ca   : > { %1427 = vmatpush1.bf16.msra.mxu1 %v2312_v54 }
 0x3cb   : > { %1428 = vmatprep.subr.bf16.mxu1 %v2317_v56 }
 0x3ce   : > { %1429 = vmatpush1.bf16.msra.mxu1 %v2315_v58 }
 0x479   : > { %v1122_v59 = vpop.f32.mrb[8].mxu0 }
 0x47a   : > { %v1126_v60 = vmax.f32 %v1122_v59, 0.0  ;;  %v1972_v61 = vpop.f32.mrb[9].mxu0 }
 0x47c   : > { %v1127_v62 = vadd.f32 1e-05, %v1126_v60 }
 0x47e   : > { %2318 = vrsqrt.f32 %v1127_v62 }
 0x488   : > { %v2319_v63 = vpop.eup %2318 }
 0x489   : > { %v1129_v1 = vmul.f32 %v2319_v63, %v3082_v35 }
 0x48b   : > { %v1134_v3 = vmul.f32 %v1731_v0, %v1129_v1 }
 0x48d   : > { %v1139_v4 = vadd.f32 %v1732_v2, %v1134_v3 }
 0x48f   : > { %v1733_v5 = vmul.f32 -1.442695, %v1139_v4 }
 0x491   : > { %2320 = vpow2.f32 %v1733_v5 }
 0x499   : > { %v1286_v6 = vpop.f32.mrb[10].mxu0 }
 0x49a   : > { %v1290_v7 = vmax.f32 %v1286_v6, 0.0  ;;  %v2042_v8 = vpop.f32.mrb[11].mxu0 }
 0x49b   : > { %v2321_v10 = vpop.eup %2320 }
 0x49c   : > { %v1291_v9 = vadd.f32 1e-05, %v1290_v7  ;;  %v1143_v11 = vadd.f32 1.0, %v2321_v10 }
 0x49e   : > { %2322 = vrsqrt.f32 %v1291_v9 }
 0x49f   : > { %2324 = vrcp.f32 %v1143_v11 }
 0x4a8   : > { %v2323_v12 = vpop.eup %2322 }
 0x4a9   : > { %v1293_v14 = vmul.f32 %v2323_v12, %v1218_v39  ;;  %v2325_v18 = vpop.eup %2324 }
 0x4ab   : > { %v1298_v16 = vmul.f32 %v1734_v13, %v1293_v14 }
 0x4ad   : > { %v1303_v17 = vadd.f32 %v1735_v15, %v1298_v16 }
 0x4af   : > { %v1304_v19 = vmul.f32 %v2325_v18, %v1303_v17 }
 0x4b1   : > { %v1305_v20 = vpack.c.bf16 %v1304_v19, %v1304_v19 }
 0x4b3   : > { %1447 = vmatmul.mubr.bf16.vlgmr.msra.gmra.mrb[8].mxu1 %v1305_v20 }
 0x586   : > { %v1448_v27 = vpop.f32.mrb[8].mxu1 }
 0x587   : > { %v1449_v28 = vadd.f32 %v1448_v27, %v1327_v25  ;;  %v1450_v29 = vpop.f32.mrb[9].mxu1 }
 0x588   : > { %v1451_v31 = vadd.f32 %v1450_v29, %v1331_v26  ;;  %v1452_v32 = vpop.f32.mrb[10].mxu1 }
 0x589   : > { %v1453_v33 = vpop.f32.mrb[11].mxu1 }
 0x58a   : > { %v1455_v34 = vadd.f32 %v1451_v31, %v1449_v28 }
 0x58c   : > { %1456 = vadd.xlane.f32.xlu0 %v1455_v34 }
 0x619   : > { %v1457_v35 = vpop.xlane.xlu0 %1456 }
 0x61a   : > { %v1459_v36 = vmul.f32 0.00390625, %v1457_v35 }
 0x61c   : > { %v1460_v30 = vsub.f32 %v1449_v28, %v1459_v36  ;;  %v1461_v37 = vsub.f32 %v1451_v31, %v1459_v36 }
 0x61e   : > { %v1462_v38 = vmul.f32 %v1460_v30, %v1460_v30  ;;  %v1463_v39 = vmul.f32 %v1461_v37, %v1461_v37 }
 0x620   : > { %v1464_v40 = vadd.f32 %v1463_v39, %v1462_v38 }
 0x622   : > { %1465 = vadd.xlane.f32.xlu1 %v1464_v40 }
 0x6af   : > { %v1466_v41 = vpop.xlane.xlu1 %1465 }
 0x6b0   : > { %v1467_v42 = vmul.f32 0.00390625, %v1466_v41 }
 0x6b2   : > { %v1468_v43 = vadd.f32 1e-05, %v1467_v42 }
 0x6b4   : > { %2326 = vrsqrt.f32 %v1468_v43 }
 0x6be   : > { %v2327_v48 = vpop.eup %2326 }
 0x6bf   : > { %v1470_v51 = vmul.f32 %v2327_v48, %v1460_v30  ;;  %v1471_v52 = vmul.f32 %v2327_v48, %v1461_v37 }
 0x6c1   : > { %v1485_v53 = vmul.f32 %v1478_v46, %v1470_v51  ;;  %v1486_v54 = vmul.f32 %v1482_v47, %v1471_v52 }
 0x6c3   : > { %v1500_v55 = vadd.f32 %v1493_v49, %v1485_v53  ;;  %v1501_v56 = vadd.f32 %v1497_v50, %v1486_v54 }
 0x6c5   : > { %v1502_v57 = vmax.f32 %v1500_v55, 0.0  ;;  %v1503_v58 = vmax.f32 %v1501_v56, 0.0 }
 0x6c7   : > { %1504 = vst [vmem:[%s485_s27] sm:$0xff] %v1502_v57  ;;  %1505 = vst [vmem:[%s485_s27 + $0x8] sm:$0xff] %v1503_v58 }
 0x6c8   : > { %2541 = shalt.err (!%p2538_p7)
}
 0x6c9   : > { %s2542_s4 = scalar_lea.hbm %s3131_s17, 256  ;;  %s2546_s9 = scalar_lea.hbm %s3225_s6, 512 }
 0x6ca   : > { %p2543_p11 = scmp.ne.s32.totalorder %s3131_s17, %s2542_s4  ;;  %p2547_p12 = scmp.lt.u32.totalorder %s3131_s17, %s3225_s6 }
 0x6cb   : > { %p2548_p1 = scmp.lt.u32.totalorder %s2546_s9, %s2542_s4  ;;  %p2550_p0 = scmp.lt.u32.totalorder %s2542_s4, %s3131_s17 }
 0x6cc   : > { %p2544_p8 = pnand %p2543_p11, %p3226_p2 }
 0x6cd   : > { %p2549_p13 = por %p2548_p1, %p2547_p12 }
 0x6ce   : > { %p2545_p4 = pneg %p2544_p8 }
 0x6cf   : > { %p2551_p6 = por %p2550_p0, %p2549_p13 }
 0x6d1   : > { %p2552_p10 = pnand %p2551_p6, %p2545_p4 }
 0x6d3   : > { %2555 = shalt.err (!%p2552_p10)
}
 0x6d4   : > { %2163 = dma.vmem_to_hbm [thread:$0]  (%p3226_p2), %s3133_s21, 256, %s3131_s17, %s1507_s22  }
 0x6d5 PF: > { %s1533_s5 = sand.u32 1, %s2598_s13   ;;  %p3227_p5 = scmp.ne.s32.totalorder %s3214_s12, 0 }
 0x6d6   : > { %p3228_p9 = scmp.ge.s32.totalorder %s2610_s16, 2  ;;  %s1534_s27 = scalar_lea.sflag [#allocation4], %s1533_s5 }
 0x6d8   : > { %p2189_p3 = pnand %p3228_p9, %p3227_p5 }
 0x6da   : > { %2593 = dma.done.wait (!%p2189_p3), %s1534_s27, 256  }
 0x6db   : > { %2595 = vsyncadd (!%p2189_p3), %s1534_s27, 4294967040  ;;  %p28_p7 = scmp.ge.s32.totalorder %s2857_s11, 4   ;;  %s3229_s13 = smov %s2602_s14 }
 0x6dc   : > { %s3230_s14 = smov %s2606_s15  ;;  %s3231_s15 = smov %s2869_s3 }
 0x6dd   : > { %s3232_s16 = smov %s2857_s11  ;;  %30 = sbr.rel (!%p28_p7) target bundleno = 17 (0x11), region = 140 }
 0x6e4   :  { %1539 = vsyncpa [#allocation3], 1 }
 0x6e5   :  { %1541 = vsyncpa [#allocation3 + $0x1], 1 }
 0x6e6   :  { %1542 = vsyncpa [#allocation6], 1 }
 0x6e7   :  { %1544 = vsyncpa [#allocation6 + $0x1], 1 }
 0x6e8   :  { %1545 = vsyncpa [#allocation9], 1 }
 0x6e9   :  { %1546 = vsyncpa [#allocation12], 1 }
 0x6ea   :  { %1547 = vsyncpa [#allocation4], 1 }
 0x6eb   :  { %1549 = vsyncpa [#allocation4 + $0x1], 1 }

</bundles_post_ra>
